<compile_context>
chip_gen: v7x
topology: tpu7x:2x2x1
jax: 0.10.0
libtpu: 0.0.40
codegen_flags: <defaults>
</compile_context>

<pallas_src>
import jax
import jax.numpy as jnp
from jax import lax
from jax.experimental import pallas as pl
from jax.experimental.pallas import tpu as pltpu

_VMEM_LIMIT_BYTES = 48 * 1024 * 1024   # below v7x's 64 MiB physical VMEM, plenty for v5e/v6e
_TILE_VMEM_BUDGET = 12 * 1024 * 1024   # live bytes per tile (2x-buffered logits + f32 temporaries)


def _pick_tile_n(n: int, c: int, logit_itemsize: int) -> int:
    """Row tile (multiple of 128) sized so one double-buffered tile fits in the VMEM budget."""
    per_col = c * (2 * logit_itemsize + 4 * 4) + 10 * 4  # logits x2 bufs + ~4 f32 [C] temps + vectors
    t = _TILE_VMEM_BUDGET // per_col
    n_pad128 = ((n + 127) // 128) * 128
    t = max(128, min(int(t), 2048, n_pad128))
    return (t // 128) * 128


def _make_kernel(n: int, c: int, tile_n: int):
    def kernel(probs_ref, t0_ref, t1_ref, logits_ref, partial_ref, sw_ref):
        i = pl.program_id(0)

        probs = probs_ref[...]                        # [1, T] f32
        t0 = t0_ref[...]                              # [1, T] f32
        t1 = t1_ref[...]                              # [1, T] int32
        lg = logits_ref[...].astype(jnp.float32)      # [C, T]  (cast AFTER the DMA)

        # validity of padded columns (true N may not be a multiple of tile_n)
        col_idx = i * tile_n + lax.broadcasted_iota(jnp.int32, (1, tile_n), 1)
        valid = (col_idx < n).astype(jnp.float32)     # [1, T]

        # ---- loss1 partial: BCE(probs, t0), torch-style log clamp at -100 ----
        log_p = jnp.maximum(jnp.log(probs), -100.0)
        log_1mp = jnp.maximum(jnp.log(1.0 - probs), -100.0)
        bce = -(t0 * log_p + (1.0 - t0) * log_1mp) * valid
        bce_sum = jnp.sum(bce, axis=1, keepdims=True)                     # [1, 1]

        # ---- per-sample cross entropy; class axis = sublanes (axis 0) ----
        colmax = jnp.max(lg, axis=0, keepdims=True)                       # [1, T]
        shifted = lg - colmax                                             # [C, T]
        sumexp = jnp.sum(jnp.exp(shifted), axis=0, keepdims=True)         # [1, T]
        lse = colmax + jnp.log(sumexp)                                    # [1, T]
        cls = lax.broadcasted_iota(jnp.int32, (c, tile_n), 0)             # [C, T]
        picked = jnp.sum(jnp.where(cls == t1, lg, 0.0),
                         axis=0, keepdims=True)                           # [1, T]
        ce = lse - picked                                                 # [1, T]

        mask = jnp.where(t0 > 0.0, valid, 0.0)                            # gated & in-range
        cnt = jnp.sum(mask, axis=1, keepdims=True)                        # [1, 1]
        ce_sum = jnp.sum(ce * mask, axis=1, keepdims=True)                # [1, 1]

        # ---- sample_weight = |first_argmax(logits) - t1| + 1 on masked rows (unnormalized) ----
        amax = jnp.min(jnp.where(shifted == 0.0, cls, c),
                       axis=0, keepdims=True)                             # [1, T] first-max idx
        sw = (jnp.abs(amax.astype(jnp.float32) - t1.astype(jnp.float32)) + 1.0) * mask
        sw_sum = jnp.sum(sw, axis=1, keepdims=True)                       # [1, 1]
        sw_ref[...] = sw                                                  # lane-dense full-width store

        # ---- pack the four per-tile scalars into lanes 0..3 (replicated over 8 sublanes) ----
        lane = lax.broadcasted_iota(jnp.int32, (8, 128), 1)
        partial_ref[...] = (bce_sum * (lane == 0).astype(jnp.float32)
                            + ce_sum * (lane == 1).astype(jnp.float32)
                            + cnt * (lane == 2).astype(jnp.float32)
                            + sw_sum * (lane == 3).astype(jnp.float32))

    return kernel


def united_weighted_loss_argmax(probs, logits1, logits_final, target, alpha=0.5):
    """Normal-mode forward of UnitedWeightedLossArgmax.

    probs        : [N]    float -- input[0] (BCE probabilities)
    logits1      : [N, C] float -- input[1] (CE logits; original dtype kept through the DMA)
    logits_final : [N, C] float -- input[-1] (only used by the stateful 'united' mode)
    target       : [N, 2] int   -- (target0, target1)
    Returns (scalar loss, dense sample_weight[N], zeros at masked-out rows).
    """
    del logits_final  # TODO(synk): 'united' mode (stateful sample_weight + losslist[2]) not implemented
    n = int(probs.shape[0])
    c = int(logits1.shape[1])
    itemsize = jnp.dtype(logits1.dtype).itemsize

    tile_n = _pick_tile_n(n, c, itemsize)
    n_pad = ((n + tile_n - 1) // tile_n) * tile_n
    num_tiles = n_pad // tile_n
    pad = n_pad - n

    # lane-dense [1, N_pad] rows for all per-sample vectors; logits transposed to [C, N_pad]
    p_row = jnp.pad(probs.astype(jnp.float32), (0, pad), constant_values=0.5).reshape(1, n_pad)
    t0_row = jnp.pad(target[:, 0].astype(jnp.float32), (0, pad)).reshape(1, n_pad)
    t1_row = jnp.pad(target[:, 1].astype(jnp.int32), (0, pad)).reshape(1, n_pad)
    lg_t = jnp.pad(logits1.T, ((0, 0), (0, pad)))   # keeps original dtype (no f32 upcast in HBM)

    partials, sw_un = pl.pallas_call(
        _make_kernel(n, c, tile_n),
        out_shape=(
            jax.ShapeDtypeStruct((8 * num_tiles, 128), jnp.float32),  # per-tile partial sums
            jax.ShapeDtypeStruct((1, n_pad), jnp.float32),            # unnormalized sample_weight
        ),
        grid=(num_tiles,),
        in_specs=[
            pl.BlockSpec((1, tile_n), lambda i: (0, i)),
            pl.BlockSpec((1, tile_n), lambda i: (0, i)),
            pl.BlockSpec((1, tile_n), lambda i: (0, i)),
            pl.BlockSpec((c, tile_n), lambda i: (0, i)),
        ],
        out_specs=(
            pl.BlockSpec((8, 128), lambda i: (i, 0)),
            pl.BlockSpec((1, tile_n), lambda i: (0, i)),
        ),
        compiler_params=pltpu.CompilerParams(
            dimension_semantics=("parallel",),
            vmem_limit_bytes=_VMEM_LIMIT_BYTES),
        cost_estimate=pl.CostEstimate(
            flops=10 * n_pad * c,
            transcendentals=n_pad * (c + 3),
            bytes_accessed=n_pad * c * itemsize + 8 * n_pad * 4),
    )(p_row, t0_row, t1_row, lg_t)

    # tiny cross-tile reduction + final scalar normalizations (cheap XLA ops)
    sums = partials.reshape(num_tiles, 8, 128)[:, 0, :].sum(axis=0)   # [128]
    bce_sum, ce_sum, cnt, sw_sum = sums[0], sums[1], sums[2], sums[3]

    loss1 = bce_sum / float(n)
    loss2 = ce_sum / cnt            # NaN if cnt == 0 -- same as PyTorch's mean over empty selection
    loss = loss1 + float(alpha) * loss2

    sw = sw_un[0, :n] * (cnt / jnp.maximum(sw_sum, 1.0))   # sw_sum >= cnt >= 1 when cnt > 0
    return loss, sw


def _reference(probs, logits1, target, alpha):
    t0 = target[:, 0].astype(jnp.float32)
    t1 = target[:, 1].astype(jnp.int32)
    bce = -(t0 * jnp.log(probs) + (1 - t0) * jnp.log(1 - probs))
    loss1 = jnp.mean(bce)
    logp = jax.nn.log_softmax(logits1.astype(jnp.float32), axis=1)
    ce = -jnp.take_along_axis(logp, t1[:, None], axis=1)[:, 0]
    mask = t0 > 0
    cnt = jnp.sum(mask)
    loss2 = jnp.sum(jnp.where(mask, ce, 0.0)) / cnt
    amax = jnp.argmax(logits1, axis=1)
    w = jnp.where(mask, jnp.abs(amax - t1).astype(jnp.float32) + 1.0, 0.0)
    sw = w / jnp.sum(w) * cnt.astype(jnp.float32)
    return loss1 + alpha * loss2, sw


if __name__ == "__main__":
    N, C = 16, 8
    alpha = 0.5

    key = jax.random.PRNGKey(0)
    k1, k2, k3, k4, k5 = jax.random.split(key, 5)

    probs = jax.nn.sigmoid(jax.random.normal(k1, (N,), dtype=jnp.float32))
    logits1 = jax.random.normal(k2, (N, C), dtype=jnp.float32)
    logits_final = jax.random.normal(k3, (N, C), dtype=jnp.float32)
    target0 = jax.random.bernoulli(k4, 0.6, (N,)).astype(jnp.int32)
    target0 = target0.at[0].set(1)  # guarantee at least one masked-in sample
    target1 = jax.random.randint(k5, (N,), 0, C, dtype=jnp.int32)
    target = jnp.stack([target0, target1], axis=1)  # [N, 2]

    fwd = jax.jit(lambda p, l1, lf, t: united_weighted_loss_argmax(p, l1, lf, t, alpha))
    loss, sw = fwd(probs, logits1, logits_final, target)
    loss = jax.block_until_ready(loss)
    sw = jax.block_until_ready(sw)

    ref_loss, ref_sw = _reference(probs, logits1, target, alpha)
    assert jnp.allclose(loss, ref_loss, rtol=1e-5, atol=1e-5), (loss, ref_loss)
    assert jnp.allclose(sw, ref_sw, rtol=1e-5, atol=1e-5), (sw, ref_sw)
    # sample_weight of masked-in rows sums to the number of masked-in rows
    assert jnp.allclose(jnp.sum(sw), jnp.sum(target0).astype(jnp.float32), rtol=1e-5)

    print("KERNEL_OK")
</pallas_src>

<mosaic_0001>
module attributes {stable_mosaic.version = 11 : i64} {
  func.func @kernel(%arg0: i32, %arg1: memref<1x128xf32, #tpu.memory_space<vmem>>, %arg2: memref<1x128xf32, #tpu.memory_space<vmem>>, %arg3: memref<1x128xi32, #tpu.memory_space<vmem>>, %arg4: memref<8x128xf32, #tpu.memory_space<vmem>>, %arg5: memref<8x128xf32, #tpu.memory_space<vmem>>, %arg6: memref<1x128xf32, #tpu.memory_space<vmem>>) attributes {dimension_semantics = [#tpu.dimension_semantics<parallel>], iteration_bounds = array<i64: 1>, scalar_prefetch = 0 : i64, scratch_operands = 0 : i64, tpu.core_type = #tpu.core_type<tc>, window_params = [{transform_indices = @transform_0, window_bounds = array<i64: 1, 128>}, {transform_indices = @transform_1, window_bounds = array<i64: 1, 128>}, {transform_indices = @transform_2, window_bounds = array<i64: 1, 128>}, {transform_indices = @transform_3, window_bounds = array<i64: 8, 128>}, {transform_indices = @transform_4, window_bounds = array<i64: 8, 128>}, {transform_indices = @transform_5, window_bounds = array<i64: 1, 128>}]} {
    %c0 = arith.constant 0 : index
    %c0_0 = arith.constant 0 : index
    %0 = vector.load %arg1[%c0, %c0_0] : memref<1x128xf32, #tpu.memory_space<vmem>>, vector<1x128xf32>
    %c0_1 = arith.constant 0 : index
    %c0_2 = arith.constant 0 : index
    %1 = vector.load %arg2[%c0_1, %c0_2] : memref<1x128xf32, #tpu.memory_space<vmem>>, vector<1x128xf32>
    %c0_3 = arith.constant 0 : index
    %c0_4 = arith.constant 0 : index
    %2 = vector.load %arg3[%c0_3, %c0_4] : memref<1x128xi32, #tpu.memory_space<vmem>>, vector<1x128xi32>
    %c0_5 = arith.constant 0 : index
    %c0_6 = arith.constant 0 : index
    %3 = vector.load %arg4[%c0_5, %c0_6] : memref<8x128xf32, #tpu.memory_space<vmem>>, vector<8x128xf32>
    %c128_i32 = arith.constant 128 : i32
    %4 = arith.muli %arg0, %c128_i32 : i32
    %5 = tpu.iota {dimensions = array<i32: 1>} : vector<1x128xi32>
    %6 = vector.broadcast %4 : i32 to vector<1x128xi32>
    %7 = arith.addi %6, %5 : vector<1x128xi32>
    %c16_i32 = arith.constant 16 : i32
    %8 = vector.broadcast %c16_i32 : i32 to vector<1x128xi32>
    %9 = arith.cmpi slt, %7, %8 : vector<1x128xi32>
    %10 = arith.extui %9 : vector<1x128xi1> to vector<1x128xi32>
    %11 = arith.sitofp %10 : vector<1x128xi32> to vector<1x128xf32>
    %12 = math.log %0 : vector<1x128xf32>
    %cst = arith.constant -1.000000e+02 : f32
    %13 = vector.broadcast %cst : f32 to vector<1x128xf32>
    %14 = arith.maximumf %12, %13 : vector<1x128xf32>
    %cst_7 = arith.constant 1.000000e+00 : f32
    %15 = vector.broadcast %cst_7 : f32 to vector<1x128xf32>
    %16 = arith.subf %15, %0 : vector<1x128xf32>
    %17 = math.log %16 : vector<1x128xf32>
    %cst_8 = arith.constant -1.000000e+02 : f32
    %18 = vector.broadcast %cst_8 : f32 to vector<1x128xf32>
    %19 = arith.maximumf %17, %18 : vector<1x128xf32>
    %20 = arith.mulf %1, %14 : vector<1x128xf32>
    %cst_9 = arith.constant 1.000000e+00 : f32
    %21 = vector.broadcast %cst_9 : f32 to vector<1x128xf32>
    %22 = arith.subf %21, %1 : vector<1x128xf32>
    %23 = arith.mulf %22, %19 : vector<1x128xf32>
    %24 = arith.addf %20, %23 : vector<1x128xf32>
    %cst_10 = arith.constant 0.000000e+00 : f32
    %25 = vector.broadcast %cst_10 : f32 to vector<1x128xf32>
    %26 = arith.subf %25, %24 : vector<1x128xf32>
    %27 = arith.mulf %26, %11 : vector<1x128xf32>
    %cst_11 = arith.constant dense<0.000000e+00> : vector<1xf32>
    %28 = vector.multi_reduction <add>, %27, %cst_11 [1] : vector<1x128xf32> to vector<1xf32>
    %29 = vector.shape_cast %28 : vector<1xf32> to vector<1x1xf32>
    %cst_12 = arith.constant dense<0xFF800000> : vector<128xf32>
    %30 = vector.multi_reduction <maximumf>, %3, %cst_12 [0] : vector<8x128xf32> to vector<128xf32>
    %31 = vector.shape_cast %30 : vector<128xf32> to vector<1x128xf32>
    %32 = vector.broadcast %31 : vector<1x128xf32> to vector<8x128xf32>
    %33 = arith.subf %3, %32 : vector<8x128xf32>
    %34 = math.exp %33 : vector<8x128xf32>
    %cst_13 = arith.constant dense<0.000000e+00> : vector<128xf32>
    %35 = vector.multi_reduction <add>, %34, %cst_13 [0] : vector<8x128xf32> to vector<128xf32>
    %36 = vector.shape_cast %35 : vector<128xf32> to vector<1x128xf32>
    %37 = math.log %36 : vector<1x128xf32>
    %38 = arith.addf %31, %37 : vector<1x128xf32>
    %39 = tpu.iota {dimensions = array<i32: 0>} : vector<8x128xi32>
    %40 = vector.broadcast %2 : vector<1x128xi32> to vector<8x128xi32>
    %41 = arith.cmpi eq, %39, %40 : vector<8x128xi32>
    %cst_14 = arith.constant 0.000000e+00 : f32
    %42 = vector.broadcast %cst_14 : f32 to vector<8x128xf32>
    %43 = arith.select %41, %3, %42 : vector<8x128xi1>, vector<8x128xf32>
    %cst_15 = arith.constant dense<0.000000e+00> : vector<128xf32>
    %44 = vector.multi_reduction <add>, %43, %cst_15 [0] : vector<8x128xf32> to vector<128xf32>
    %45 = vector.shape_cast %44 : vector<128xf32> to vector<1x128xf32>
    %46 = arith.subf %38, %45 : vector<1x128xf32>
    %cst_16 = arith.constant 0.000000e+00 : f32
    %47 = vector.broadcast %cst_16 : f32 to vector<1x128xf32>
    %48 = arith.cmpf ogt, %1, %47 : vector<1x128xf32>
    %cst_17 = arith.constant 0.000000e+00 : f32
    %49 = vector.broadcast %cst_17 : f32 to vector<1x128xf32>
    %50 = arith.select %48, %11, %49 : vector<1x128xi1>, vector<1x128xf32>
    %cst_18 = arith.constant dense<0.000000e+00> : vector<1xf32>
    %51 = vector.multi_reduction <add>, %50, %cst_18 [1] : vector<1x128xf32> to vector<1xf32>
    %52 = vector.shape_cast %51 : vector<1xf32> to vector<1x1xf32>
    %53 = arith.mulf %46, %50 : vector<1x128xf32>
    %cst_19 = arith.constant dense<0.000000e+00> : vector<1xf32>
    %54 = vector.multi_reduction <add>, %53, %cst_19 [1] : vector<1x128xf32> to vector<1xf32>
    %55 = vector.shape_cast %54 : vector<1xf32> to vector<1x1xf32>
    %cst_20 = arith.constant 0.000000e+00 : f32
    %56 = vector.broadcast %cst_20 : f32 to vector<8x128xf32>
    %57 = arith.cmpf oeq, %33, %56 : vector<8x128xf32>
    %c8_i32 = arith.constant 8 : i32
    %58 = vector.broadcast %c8_i32 : i32 to vector<8x128xi32>
    %59 = arith.select %57, %39, %58 : vector<8x128xi1>, vector<8x128xi32>
    %cst_21 = arith.constant dense<2147483647> : vector<128xi32>
    %60 = vector.multi_reduction <minsi>, %59, %cst_21 [0] : vector<8x128xi32> to vector<128xi32>
    %61 = vector.shape_cast %60 : vector<128xi32> to vector<1x128xi32>
    %62 = arith.sitofp %61 : vector<1x128xi32> to vector<1x128xf32>
    %63 = arith.sitofp %2 : vector<1x128xi32> to vector<1x128xf32>
    %64 = arith.subf %62, %63 : vector<1x128xf32>
    %65 = math.absf %64 : vector<1x128xf32>
    %cst_22 = arith.constant 1.000000e+00 : f32
    %66 = vector.broadcast %cst_22 : f32 to vector<1x128xf32>
    %67 = arith.addf %65, %66 : vector<1x128xf32>
    %68 = arith.mulf %67, %50 : vector<1x128xf32>
    %cst_23 = arith.constant dense<0.000000e+00> : vector<1xf32>
    %69 = vector.multi_reduction <add>, %68, %cst_23 [1] : vector<1x128xf32> to vector<1xf32>
    %70 = vector.shape_cast %69 : vector<1xf32> to vector<1x1xf32>
    %c0_24 = arith.constant 0 : index
    %c0_25 = arith.constant 0 : index
    %71 = vector.load %arg6[%c0_24, %c0_25] : memref<1x128xf32, #tpu.memory_space<vmem>>, vector<1x128xf32>
    tpu.vector_store %arg6[%c0_24, %c0_25], %68 {strides = array<i32>} : memref<1x128xf32, #tpu.memory_space<vmem>>, vector<1x128xf32>,
    %72 = tpu.iota {dimensions = array<i32: 1>} : vector<8x128xi32>
    %c0_i32 = arith.constant 0 : i32
    %73 = vector.broadcast %c0_i32 : i32 to vector<8x128xi32>
    %74 = arith.cmpi eq, %72, %73 : vector<8x128xi32>
    %75 = arith.extui %74 : vector<8x128xi1> to vector<8x128xi32>
    %76 = arith.sitofp %75 : vector<8x128xi32> to vector<8x128xf32>
    %77 = vector.broadcast %29 : vector<1x1xf32> to vector<8x128xf32>
    %78 = arith.mulf %77, %76 : vector<8x128xf32>
    %c1_i32 = arith.constant 1 : i32
    %79 = vector.broadcast %c1_i32 : i32 to vector<8x128xi32>
    %80 = arith.cmpi eq, %72, %79 : vector<8x128xi32>
    %81 = arith.extui %80 : vector<8x128xi1> to vector<8x128xi32>
    %82 = arith.sitofp %81 : vector<8x128xi32> to vector<8x128xf32>
    %83 = vector.broadcast %55 : vector<1x1xf32> to vector<8x128xf32>
    %84 = arith.mulf %83, %82 : vector<8x128xf32>
    %85 = arith.addf %78, %84 : vector<8x128xf32>
    %c2_i32 = arith.constant 2 : i32
    %86 = vector.broadcast %c2_i32 : i32 to vector<8x128xi32>
    %87 = arith.cmpi eq, %72, %86 : vector<8x128xi32>
    %88 = arith.extui %87 : vector<8x128xi1> to vector<8x128xi32>
    %89 = arith.sitofp %88 : vector<8x128xi32> to vector<8x128xf32>
    %90 = vector.broadcast %52 : vector<1x1xf32> to vector<8x128xf32>
    %91 = arith.mulf %90, %89 : vector<8x128xf32>
    %92 = arith.addf %85, %91 : vector<8x128xf32>
    %c3_i32 = arith.constant 3 : i32
    %93 = vector.broadcast %c3_i32 : i32 to vector<8x128xi32>
    %94 = arith.cmpi eq, %72, %93 : vector<8x128xi32>
    %95 = arith.extui %94 : vector<8x128xi1> to vector<8x128xi32>
    %96 = arith.sitofp %95 : vector<8x128xi32> to vector<8x128xf32>
    %97 = vector.broadcast %70 : vector<1x1xf32> to vector<8x128xf32>
    %98 = arith.mulf %97, %96 : vector<8x128xf32>
    %99 = arith.addf %92, %98 : vector<8x128xf32>
    %c0_26 = arith.constant 0 : index
    %c0_27 = arith.constant 0 : index
    %100 = vector.load %arg5[%c0_26, %c0_27] : memref<8x128xf32, #tpu.memory_space<vmem>>, vector<8x128xf32>
    tpu.vector_store %arg5[%c0_26, %c0_27], %99 {strides = array<i32>} : memref<8x128xf32, #tpu.memory_space<vmem>>, vector<8x128xf32>,
    return
  }
  func.func @transform_0(%arg0: i32) -> (i32, i32) {
    %c0_i32 = arith.constant 0 : i32
    %c0_i32_0 = arith.constant 0 : i32
    return %c0_i32, %arg0 : i32, i32
  }
  func.func @transform_1(%arg0: i32) -> (i32, i32) {
    %c0_i32 = arith.constant 0 : i32
    %c0_i32_0 = arith.constant 0 : i32
    return %c0_i32, %arg0 : i32, i32
  }
  func.func @transform_2(%arg0: i32) -> (i32, i32) {
    %c0_i32 = arith.constant 0 : i32
    %c0_i32_0 = arith.constant 0 : i32
    return %c0_i32, %arg0 : i32, i32
  }
  func.func @transform_3(%arg0: i32) -> (i32, i32) {
    %c0_i32 = arith.constant 0 : i32
    %c0_i32_0 = arith.constant 0 : i32
    return %c0_i32, %arg0 : i32, i32
  }
  func.func @transform_4(%arg0: i32) -> (i32, i32) {
    %c0_i32 = arith.constant 0 : i32
    %c0_i32_0 = arith.constant 0 : i32
    return %arg0, %c0_i32 : i32, i32
  }
  func.func @transform_5(%arg0: i32) -> (i32, i32) {
    %c0_i32 = arith.constant 0 : i32
    %c0_i32_0 = arith.constant 0 : i32
    return %c0_i32, %arg0 : i32, i32
  }
}

</mosaic_0001>

<bundles_post_ra>
// kernel: _lambda_.1
= control target key start
LH: loop header
LB: loop body
LE: loop exit
PB: predicated region body
PF: predicated region fallthrough
CT: control target
= control target key end

     0   :  { %v24_v0 = vlaneseq  ;;  %v169_v7 = vmov 0.0   ;;  %vm44_vm2 = vcmask 1040384   ;;  %s246_s0 = inlined_call_operand.vmem [shape: f32[1,128], index: 0, kind: input, shape index: {}]   ;;  %s247_s1 = inlined_call_operand.vmem [shape: f32[1,128], index: 1, kind: input, shape index: {}]   ;;  %s248_s3 = inlined_call_operand.vmem [shape: f32[8,128], index: 3, kind: input, shape index: {}]   ;;  %s249_s2 = inlined_call_operand.vmem [shape: s32[1,128], index: 2, kind: input, shape index: {}]   ;;  %s250_s5 = inlined_call_operand.vmem [shape: f32[1,128], index: 5, kind: output, shape index: {1}]   ;;  %s251_s4 = inlined_call_operand.vmem [shape: f32[8,128], index: 4, kind: output, shape index: {0}]  }
   0x1   :  { %v19_v1 = vld [vmem:[%s246_s0] sm:$0x1] }
   0x2   :  { %v20_v2 = vld [vmem:[%s247_s1] sm:$0x1]  ;;  %v206_v3 = vand.u32 127, %v24_v0  ;;  %161 = vlog2.f32 %v19_v1  ;;  %v34_v4 = vsub.f32 1.0, %v19_v1  ;;  %v67_v23 = vshrl.u32 %v24_v0, 7 }
   0x3   :  { %v22_v5 = vld [vmem:[%s248_s3] sm:$0xff]  ;;  %vm81_vm0 = vcmp.gt.f32.partialorder %v20_v2, 0.0  ;;  %v39_v19 = vsub.f32 1.0, %v20_v2 }
   0x4   :  { %v48_v6 = vrot.slane %v22_v5, 4  ;;  %vm28_vm1 = vcmp.lt.s32.totalorder %v206_v3, 16  ;;  %163 = vlog2.f32 %v34_v4  ;;  %v217_v28 = vsub.s32 0, %v67_v23  ;;  %v21_v30 = vld [vmem:[%s249_s2] sm:$0x1] }
   0x5   :  { %v155_v8 = vsel %vm28_vm1, 1.0, %v169_v7  ;;  %v102_v44 = vcvt.s32.f32 %v21_v30  ;;  %vm111_vm8 = vcmp.eq.s32.totalorder %v206_v3, 0  ;;  %vm119_vm9 = vcmp.eq.s32.totalorder %v206_v3, 1 }
   0x6   :  { %v49_v9 = vmax.f32 %v22_v5, %v48_v6  ;;  %v213_v10 = vsel %vm81_vm0, %v155_v8, 0.0  ;;  %v71_v34 = vrot.slane %v21_v30, %v217_v28  ;;  %vm128_vm10 = vcmp.eq.s32.totalorder %v206_v3, 2 }
   0x7   :  { %v83_v11 = vsel %vm44_vm2, %v213_v10, 0.0  ;;  %vm137_vm11 = vcmp.eq.s32.totalorder %v206_v3, 3 }
   0x8   :  { %v50_v12 = vrot.slane %v49_v9, 2  ;;  %84 = vadd.xlane.f32.xlu1 %v83_v11  ;;  %vm72_vm6 = vcmp.eq.s32.totalorder %v67_v23, %v71_v34 }
   0x9   :  { %v73_v43 = vsel %vm72_vm6, %v22_v5, 0.0 }
   0xa   :  { %v51_v13 = vmax.f32 %v49_v9, %v50_v12  ;;  %v74_v48 = vrot.slane %v73_v43, 4  ;;  %v156_v12 = vsel %vm111_vm8, 1.0, %v169_v7 }
   0xc   :  { %v52_v14 = vrot.slane %v51_v13, 1  ;;  %v162_v15 = vpop.eup %161  ;;  %v75_v53 = vadd.f32 %v74_v48, %v73_v43 }
   0xd   :  { %v32_v16 = vmul.f32 0.6931472, %v162_v15 }
   0xe   :  { %v53_v17 = vmax.f32 %v51_v13, %v52_v14  ;;  %v164_v18 = vpop.eup %163  ;;  %v76_v58 = vrot.slane %v75_v53, 2 }
   0xf   :  { %v33_v20 = vmax.f32 %v32_v16, -100.0  ;;  %v36_v21 = vmul.f32 0.6931472, %v164_v18  ;;  %v159_v18 = vsel %vm137_vm11, 1.0, %v169_v7 }
  0x10   :  { %v54_v22 = vsub.f32 %v22_v5, %v53_v17  ;;  %v77_v60 = vadd.f32 %v76_v58, %v75_v53 }
  0x11   :  { %v37_v24 = vmax.f32 %v36_v21, -100.0  ;;  %v38_v25 = vmul.f32 %v33_v20, %v20_v2 }
  0x12   :  { %v55_v26 = vmul.f32 1.442695, %v54_v22  ;;  %vm90_vm3 = vcmp.eq.f32.partialorder %v54_v22, 0.0  ;;  %v78_v61 = vrot.slane %v77_v60, 1 }
  0x13   :  { %v40_v27 = vmul.f32 %v39_v19, %v37_v24  ;;  %v91_v29 = vsel %vm90_vm3, %v67_v23, 8 }
  0x14   :  { %165 = vpow2.f32 %v55_v26  ;;  %v92_v31 = vrot.slane %v91_v29, 4  ;;  %v79_v0 = vadd.f32 %v78_v61, %v77_v60 }
  0x15   :  { %v41_v32 = vadd.f32 %v40_v27, %v38_v25 }
  0x16   :  { %vm93_vm4 = vcmp.lt.s32.totalorder %v91_v29, %v92_v31 }
  0x17   :  { %v42_v33 = vsub.f32 0.0, %v41_v32  ;;  %v94_v35 = vsel %vm93_vm4, %v91_v29, %v92_v31 }
  0x18   :  { %v95_v36 = vrot.slane %v94_v35, 2 }
  0x19   :  { %v43_v37 = vmul.f32 %v155_v8, %v42_v33 }
  0x1a   :  { %vm96_vm5 = vcmp.lt.s32.totalorder %v94_v35, %v95_v36 }
  0x1b   :  { %v45_v38 = vsel %vm44_vm2, %v43_v37, 0.0  ;;  %v97_v39 = vsel %vm96_vm5, %v94_v35, %v95_v36 }
  0x1c   :  { %46 = vadd.xlane.f32.xlu0 %v45_v38  ;;  %v98_v40 = vrot.slane %v97_v39, 1 }
  0x1e   :  { %v166_v41 = vpop.eup %165  ;;  %vm99_vm7 = vcmp.lt.s32.totalorder %v97_v39, %v98_v40 }
  0x1f   :  { %v57_v42 = vrot.slane %v166_v41, 4  ;;  %v100_v45 = vsel %vm99_vm7, %v97_v39, %v98_v40 }
  0x20   :  { %v101_v47 = vcvt.s32.f32 %v100_v45 }
  0x21   :  { %v58_v46 = vadd.f32 %v166_v41, %v57_v42 }
  0x22   :  { %v103_v50 = vsub.f32 %v101_v47, %v102_v44 }
  0x23   :  { %v59_v49 = vrot.slane %v58_v46, 2 }
  0x24   :  { %v104_v52 = vand.u32 2147483647, %v103_v50 }
  0x25   :  { %v60_v51 = vadd.f32 %v59_v49, %v58_v46 }
  0x26   :  { %v105_v55 = vadd.f32 1.0, %v104_v52 }
  0x27   :  { %v61_v54 = vrot.slane %v60_v51, 1 }
  0x28   :  { %v106_v57 = vmul.f32 %v105_v55, %v213_v10 }
  0x29   :  { %v62_v56 = vadd.f32 %v61_v54, %v60_v51 }
  0x2a   :  { %v107_v59 = vsel %vm44_vm2, %v106_v57, 0.0  ;;  %110 = vst [vmem:[%s250_s5] sm:$0x1] %v106_v57 }
  0x2b   :  { %167 = vlog2.f32 %v62_v56  ;;  %108 = vadd.xlane.f32.xlu1 %v107_v59 }
  0x35   :  { %v168_v62 = vpop.eup %167 }
  0x36   :  { %v64_v63 = vmul.f32 0.6931472, %v168_v62 }
  0x38   :  { %v65_v1 = vadd.f32 %v64_v63, %v53_v17  ;;  %v158_v17 = vsel %vm128_vm10, 1.0, %v169_v7 }
  0x3a   :  { %v80_v2 = vsub.f32 %v65_v1, %v79_v0 }
  0x3c   :  { %v86_v4 = vmul.f32 %v213_v10, %v80_v2  ;;  %v157_v10 = vsel %vm119_vm9, 1.0, %v169_v7 }
  0x3e   :  { %v87_v5 = vsel %vm44_vm2, %v86_v4, 0.0 }
  0x3f   :  { %88 = vadd.xlane.f32.xlu0 %v87_v5 }
  0x95   :  { %v85_v6 = vpop.xlane.xlu1 %84 }
  0x96   :  { %v134_v14 = vrot.slane %v85_v6, %v217_v28 }
  0x98   :  { %v135_v21 = vmul.f32 %v158_v17, %v134_v14 }
  0xa9   :  { %v47_v8 = vpop.xlane.xlu0 %46 }
  0xaa   :  { %v117_v11 = vrot.slane %v47_v8, %v217_v28 }
  0xac   :  { %v118_v19 = vmul.f32 %v156_v12, %v117_v11 }
  0xb8   :  { %v109_v9 = vpop.xlane.xlu1 %108 }
  0xb9   :  { %v143_v16 = vrot.slane %v109_v9, %v217_v28 }
  0xbb   :  { %v144_v3 = vmul.f32 %v159_v18, %v143_v16 }
  0xcc   :  { %v89_v13 = vpop.xlane.xlu0 %88 }
  0xcd   :  { %v125_v15 = vrot.slane %v89_v13, %v217_v28 }
  0xcf   :  { %v126_v20 = vmul.f32 %v157_v10, %v125_v15 }
  0xd1   :  { %v127_v22 = vadd.f32 %v126_v20, %v118_v19 }
  0xd3   :  { %v136_v23 = vadd.f32 %v135_v21, %v127_v22 }
  0xd5   :  { %v145_v24 = vadd.f32 %v144_v3, %v136_v23 }
  0xd7   :  { %146 = vst [vmem:[%s251_s4] sm:$0xff] %v145_v24 }

</bundles_post_ra>
